<compile_context>
chip_gen: v7x
topology: tpu7x:2x2x1
jax: 0.10.0
libtpu: 0.0.40
codegen_flags: <defaults>
</compile_context>

<pallas_src>
import functools

import jax
import jax.numpy as jnp
from jax.experimental import pallas as pl
from jax.experimental.pallas import tpu as pltpu


_SQRT1_2 = 0.7071067811865476


def _erf_approx(x):
    """Abramowitz & Stegun 7.1.26 erf, |err| < 1.5e-7 (plus approx-rcp noise).

    Uses only exp / mul / add / select / EUP-reciprocal so it lowers on every TPU
    generation; the divide is pushed to the EUP slot via pl.reciprocal(approx=True).
    """
    a1, a2, a3, a4, a5 = (0.254829592, -0.284496736, 1.421413741,
                          -1.453152027, 1.061405429)
    p = 0.3275911
    ax = jnp.abs(x)
    t = pl.reciprocal(1.0 + p * ax, approx=True)          # EUP, not VALU divide
    poly = ((((a5 * t + a4) * t + a3) * t + a2) * t + a1) * t
    e = 1.0 - poly * jnp.exp(-(ax * ax))
    return jnp.where(x >= 0.0, e, -e)


def _gelu_exact(x):
    return 0.5 * x * (1.0 + _erf_approx(x * _SQRT1_2))


def _local_block_kernel(x_ref, w1_ref, b1_ref, wc_ref, bc_ref, w2_ref, b2_ref,
                        o_ref, hc_ref, *, l_valid, need_mask):
    # x_ref : (1, 1, TL+8, Din_p) bf16  rows 0..TL-1: x tile; row TL: prev-halo row
    #                                   (x[i*TL-1]); row TL+1: next-halo row
    #                                   (x[(i+1)*TL]); rows TL+2..TL+7: zero pad.
    # w1_ref: (Din_p, H_p)   bf16  linear1 weight, pre-transposed
    # b1_ref: (1, H_p)       f32
    # wc_ref: (3*H_p, H_p)   bf16  conv taps k=0,1,2 stacked along K
    # bc_ref: (1, H_p)       f32
    # w2_ref: (H_p, Dout_p)  bf16  linear2 weight, pre-transposed
    # b2_ref: (1, Dout_p)    f32
    # o_ref : (1, TL, Dout_p) f32
    # hc_ref: (TL, 3*H_p)    bf16  scratch slab [h_prev | h | h_next]
    i = pl.program_id(1)
    tl = o_ref.shape[1]
    hp = w1_ref.shape[1]

    # ---- linear1 on the tile AND its 2 halo rows in a single MXU pass ----
    h_ext = jnp.dot(x_ref[0, 0], w1_ref[...],
                    preferred_element_type=jnp.float32) + b1_ref[...]   # (TL+8, H_p)
    h = h_ext[:tl]                                                      # (TL, H_p)

    # Rows past the true sequence length (L padded up to a multiple of TL) must act
    # as the conv's zero padding.  Only trace the mask when padding actually exists.
    if need_mask:
        row = jax.lax.broadcasted_iota(jnp.int32, (tl, 1), 0)
        h = jnp.where(i * tl + row < l_valid, h, 0.0)

    # Halo rows; zeroed when they fall outside the true sequence.
    prev_scale = (i > 0).astype(jnp.float32)                   # row i*TL-1 exists?
    next_scale = ((i + 1) * tl < l_valid).astype(jnp.float32)  # row (i+1)*TL < L ?
    prev_row = (h_ext[tl:tl + 1] * prev_scale).astype(jnp.bfloat16)     # (1, H_p)
    next_row = (h_ext[tl + 1:tl + 2] * next_scale).astype(jnp.bfloat16)

    # ---- build the [h[t-1] | h[t] | h[t+1]] slab with direct sliced stores ----
    hb = h.astype(jnp.bfloat16)                 # single bf16 cast of the tile
    hc_ref[:, hp:2 * hp] = hb                   # center tap (aligned full store)
    hc_ref[1:, 0:hp] = hb[:tl - 1]              # prev tap rows 1..TL-1
    hc_ref[0:1, 0:hp] = prev_row                # prev tap row 0 = halo
    hc_ref[:tl - 1, 2 * hp:3 * hp] = hb[1:]     # next tap rows 0..TL-2
    hc_ref[tl - 1:tl, 2 * hp:3 * hp] = next_row  # next tap last row = halo

    # ---- fused k=3 conv: ONE (TL, 3H) @ (3H, H) matmul ----
    # TODO(synk): on v5e (single vst slot) three accumulating dots may beat the slab.
    y = jnp.dot(hc_ref[...], wc_ref[...],
                preferred_element_type=jnp.float32) + bc_ref[...]       # (TL, H_p)

    # GELU (exact-erf form, f32 elementwise); Dropout(p=0) is the identity.
    a = _gelu_exact(y)

    # ---- linear2 ----
    out = jnp.dot(a.astype(jnp.bfloat16), w2_ref[...],
                  preferred_element_type=jnp.float32) + b2_ref[...]     # (TL, Dout_p)
    o_ref[0] = out.astype(o_ref.dtype)


def _round_up(v, m):
    return ((v + m - 1) // m) * m


def _pad2(a, rows, cols):
    return jnp.zeros((rows, cols), a.dtype).at[:a.shape[0], :a.shape[1]].set(a)


def _pick_vmem_limit(tl, din_p, h_p, dout_p):
    """Size the VMEM limit from the actual buffers (+headroom), capped by the chip."""
    bf2, f4 = 2, 4
    x_blk = (tl + 8) * din_p * bf2
    out_blk = tl * dout_p * f4
    weights = (din_p * h_p + 3 * h_p * h_p + h_p * dout_p) * bf2
    biases = (2 * h_p + dout_p) * f4
    slab = tl * 3 * h_p * bf2
    temps = (tl + 8) * h_p * f4 + 2 * tl * h_p * f4 + tl * dout_p * f4
    # Pallas double-buffers every pipelined operand (incl. the constant-index weight
    # blocks); add scheduler/spill headroom on top.
    need = 2 * (x_blk + out_blk + weights + biases) + slab + temps
    try:
        cap = int(pltpu.get_tpu_info().vmem_capacity_bytes)
    except Exception:
        cap = 64 * 1024 * 1024          # v7x has the smallest VMEM: 64 MiB per TC
    limit = int(need * 1.5) + (8 << 20)
    return max(16 << 20, min(limit, cap - (8 << 20)))


def local_block(x, params, *, tile_l=512):
    """x: (B, L, in_dim) f32 -> (B, L, out_dim) f32 (matches Local_Block.forward)."""
    B, L, Din = x.shape
    w1, b1, wc, bc, w2, b2 = (params["w1"], params["b1"], params["wc"],
                              params["bc"], params["w2"], params["b2"])
    H, Dout = w1.shape[0], w2.shape[0]

    # Lane-dense channel padding and L tiling (tile_l default is a multiple of 256).
    din_p = _round_up(Din, 128)
    h_p = _round_up(H, 128)
    dout_p = _round_up(Dout, 128)
    tl = max(8, min(_round_up(tile_l, 8), _round_up(L, 8)))
    lp = _round_up(L, tl)
    n_t = lp // tl

    # ---- glue: pad / transpose / cast weights (bf16 MXU inputs, f32 biases) ----
    w1_t = _pad2(jnp.transpose(w1), din_p, h_p).astype(jnp.bfloat16)        # (Din_p, H_p)
    wc_cat = jnp.concatenate(
        [_pad2(jnp.transpose(wc[:, :, k]), h_p, h_p) for k in range(3)],
        axis=0).astype(jnp.bfloat16)                                        # (3H_p, H_p)
    w2_t = _pad2(jnp.transpose(w2), h_p, dout_p).astype(jnp.bfloat16)       # (H_p, Dout_p)
    b1_p = jnp.zeros((1, h_p), jnp.float32).at[0, :H].set(b1)
    bc_p = jnp.zeros((1, h_p), jnp.float32).at[0, :H].set(bc)
    b2_p = jnp.zeros((1, dout_p), jnp.float32).at[0, :Dout].set(b2)

    # ---- glue: pad x directly to bf16 in one pass, then stack the 2 halo rows
    #      (+6 zero rows for 8-row alignment) under each tile ----
    xp = jnp.zeros((B, lp, din_p), jnp.bfloat16)
    xp = xp.at[:, :L, :Din].set(x.astype(jnp.bfloat16))
    x_tiles = xp.reshape(B, n_t, tl, din_p)
    starts = jnp.arange(n_t) * tl
    prev_idx = jnp.clip(starts - 1, 0, lp - 1)
    next_idx = jnp.clip(starts + tl, 0, lp - 1)
    halo = jnp.zeros((B, n_t, 8, din_p), jnp.bfloat16)
    halo = halo.at[:, :, 0, :].set(xp[:, prev_idx, :])
    halo = halo.at[:, :, 1, :].set(xp[:, next_idx, :])
    x_ext = jnp.concatenate([x_tiles, halo], axis=2)         # (B, n_t, TL+8, Din_p)

    def _const(shape):  # full (weight) block, same for every grid step -> fetched once
        return pl.BlockSpec(shape, lambda b, i: (0, 0))

    out = pl.pallas_call(
        functools.partial(_local_block_kernel, l_valid=L, need_mask=bool(lp != L)),
        out_shape=jax.ShapeDtypeStruct((B, lp, dout_p), jnp.float32),
        grid_spec=pltpu.PrefetchScalarGridSpec(
            num_scalar_prefetch=0,
            grid=(B, n_t),
            in_specs=[
                pl.BlockSpec((1, 1, tl + 8, din_p), lambda b, i: (b, i, 0, 0)),  # x+halo
                _const((din_p, h_p)),                                            # w1^T
                _const((1, h_p)),                                                # b1
                _const((3 * h_p, h_p)),                                          # conv taps
                _const((1, h_p)),                                                # bc
                _const((h_p, dout_p)),                                           # w2^T
                _const((1, dout_p)),                                             # b2
            ],
            out_specs=pl.BlockSpec((1, tl, dout_p), lambda b, i: (b, i, 0)),
            scratch_shapes=[pltpu.VMEM((tl, 3 * h_p), jnp.bfloat16)],
        ),
        compiler_params=pltpu.CompilerParams(
            dimension_semantics=("parallel", "parallel"),
            vmem_limit_bytes=_pick_vmem_limit(tl, din_p, h_p, dout_p),
        ),
    )(x_ext, w1_t, b1_p, wc_cat, bc_p, w2_t, b2_p)

    # Skip the un-pad slice-copy entirely when nothing was padded.
    if lp == L and dout_p == Dout:
        return out
    return out[:, :L, :Dout]


def _reference(x, params):
    """Pure-JAX f32 reference of the PyTorch forward (for the sanity check)."""
    w1, b1, wc, bc, w2, b2 = (params["w1"], params["b1"], params["wc"],
                              params["bc"], params["w2"], params["b2"])
    h = x @ w1.T + b1                                        # (B, L, H)
    h_ncl = jnp.transpose(h, (0, 2, 1))                      # (B, H, L)
    y = jax.lax.conv_general_dilated(
        h_ncl, wc, window_strides=(1,), padding=((1, 1),),
        dimension_numbers=("NCH", "OIH", "NCH")) + bc[None, :, None]
    y = jnp.transpose(y, (0, 2, 1))                          # (B, L, H)
    a = jax.nn.gelu(y, approximate=False)
    return a @ w2.T + b2


def init_params(key, in_dim, hidden_dim, out_dim):
    ks = jax.random.split(key, 6)
    scale = 0.1
    return {
        "w1": scale * jax.random.normal(ks[0], (hidden_dim, in_dim), jnp.float32),
        "b1": scale * jax.random.normal(ks[1], (hidden_dim,), jnp.float32),
        "wc": scale * jax.random.normal(ks[2], (hidden_dim, hidden_dim, 3), jnp.float32),
        "bc": scale * jax.random.normal(ks[3], (hidden_dim,), jnp.float32),
        "w2": scale * jax.random.normal(ks[4], (out_dim, hidden_dim), jnp.float32),
        "b2": scale * jax.random.normal(ks[5], (out_dim,), jnp.float32),
    }


if __name__ == "__main__":
    def _run_case(key, B, L, in_dim, hidden_dim, out_dim, tile_l):
        kx, kp = jax.random.split(key)
        x = jax.random.normal(kx, (B, L, in_dim), jnp.float32)
        params = init_params(kp, in_dim, hidden_dim, out_dim)
        out = jax.block_until_ready(local_block(x, params, tile_l=tile_l))
        ref = _reference(x, params)
        assert out.shape == (B, L, out_dim)
        err = float(jnp.max(jnp.abs(out - ref)))
        # bf16 MXU inputs with f32 accumulation -> small deviation vs. the f32 reference.
        assert jnp.allclose(out, ref, atol=3e-2, rtol=3e-2), f"max abs err {err}"

    key = jax.random.PRNGKey(0)
    k1, k2 = jax.random.split(key)
    # Single-tile case (original demo shapes).
    _run_case(k1, B=2, L=16, in_dim=16, hidden_dim=32, out_dim=32, tile_l=512)
    # Multi-tile case: exercises halos, cross-tile conv and ragged-L masking.
    _run_case(k2, B=2, L=40, in_dim=24, hidden_dim=48, out_dim=40, tile_l=16)

    print("KERNEL_OK")
</pallas_src>

<mosaic_0001>
module attributes {stable_mosaic.version = 11 : i64} {
  func.func @_local_block_kernel(%arg0: i32, %arg1: i32, %arg2: memref<1x1x24x128xbf16, #tpu.memory_space<vmem>>, %arg3: memref<128x128xbf16, #tpu.memory_space<vmem>>, %arg4: memref<1x128xf32, #tpu.memory_space<vmem>>, %arg5: memref<384x128xbf16, #tpu.memory_space<vmem>>, %arg6: memref<1x128xf32, #tpu.memory_space<vmem>>, %arg7: memref<128x128xbf16, #tpu.memory_space<vmem>>, %arg8: memref<1x128xf32, #tpu.memory_space<vmem>>, %arg9: memref<1x16x128xf32, #tpu.memory_space<vmem>>, %arg10: memref<16x384xbf16, #tpu.memory_space<vmem>>) attributes {dimension_semantics = [#tpu.dimension_semantics<parallel>, #tpu.dimension_semantics<parallel>], iteration_bounds = array<i64: 2, 1>, scalar_prefetch = 0 : i64, scratch_operands = 1 : i64, tpu.core_type = #tpu.core_type<tc>, window_params = [{transform_indices = @transform_0, window_bounds = array<i64: 1, 1, 24, 128>}, {pipeline_mode = #tpu.pipeline_mode<synchronous>, transform_indices = @transform_1, window_bounds = array<i64: 128, 128>}, {pipeline_mode = #tpu.pipeline_mode<synchronous>, transform_indices = @transform_2, window_bounds = array<i64: 1, 128>}, {pipeline_mode = #tpu.pipeline_mode<synchronous>, transform_indices = @transform_3, window_bounds = array<i64: 384, 128>}, {pipeline_mode = #tpu.pipeline_mode<synchronous>, transform_indices = @transform_4, window_bounds = array<i64: 1, 128>}, {pipeline_mode = #tpu.pipeline_mode<synchronous>, transform_indices = @transform_5, window_bounds = array<i64: 128, 128>}, {pipeline_mode = #tpu.pipeline_mode<synchronous>, transform_indices = @transform_6, window_bounds = array<i64: 1, 128>}, {transform_indices = @transform_7, window_bounds = array<i64: 1, 16, 128>}]} {
    %c0 = arith.constant 0 : index
    %c0_0 = arith.constant 0 : index
    %c0_1 = arith.constant 0 : index
    %c0_2 = arith.constant 0 : index
    %0 = vector.load %arg2[%c0, %c0_0, %c0_1, %c0_2] : memref<1x1x24x128xbf16, #tpu.memory_space<vmem>>, vector<1x1x24x128xbf16>
    %1 = vector.shape_cast %0 : vector<1x1x24x128xbf16> to vector<24x128xbf16>
    %c0_3 = arith.constant 0 : index
    %c0_4 = arith.constant 0 : index
    %2 = vector.load %arg3[%c0_3, %c0_4] : memref<128x128xbf16, #tpu.memory_space<vmem>>, vector<128x128xbf16>
    %cst = arith.constant dense<0.000000e+00> : vector<24x128xf32>
    %3 = tpu.matmul %1, %2, %cst {dimension_numbers = #tpu.dot_dimension_numbers<[1], [0], [0], [1], [0, 0, 1, 1], [], []>} : vector<24x128xbf16>, vector<128x128xbf16>, vector<24x128xf32> -> vector<24x128xf32>
    %c0_5 = arith.constant 0 : index
    %c0_6 = arith.constant 0 : index
    %4 = vector.load %arg4[%c0_5, %c0_6] : memref<1x128xf32, #tpu.memory_space<vmem>>, vector<1x128xf32>
    %5 = vector.broadcast %4 : vector<1x128xf32> to vector<24x128xf32>
    %6 = arith.addf %3, %5 : vector<24x128xf32>
    %7 = vector.extract_strided_slice %6 {offsets = [0, 0], sizes = [16, 128], strides = [1, 1]} : vector<24x128xf32> to vector<16x128xf32>
    %c0_i32 = arith.constant 0 : i32
    %8 = arith.cmpi sgt, %arg1, %c0_i32 : i32
    %9 = arith.extui %8 : i1 to i32
    %10 = arith.sitofp %9 : i32 to f32
    %c1_i32 = arith.constant 1 : i32
    %11 = arith.addi %arg1, %c1_i32 : i32
    %c16_i32 = arith.constant 16 : i32
    %12 = arith.muli %11, %c16_i32 : i32
    %c16_i32_7 = arith.constant 16 : i32
    %13 = arith.cmpi slt, %12, %c16_i32_7 : i32
    %14 = arith.extui %13 : i1 to i32
    %15 = arith.sitofp %14 : i32 to f32
    %16 = vector.extract_strided_slice %6 {offsets = [16, 0], sizes = [1, 128], strides = [1, 1]} : vector<24x128xf32> to vector<1x128xf32>
    %17 = vector.broadcast %10 : f32 to vector<1x128xf32>
    %18 = arith.mulf %16, %17 : vector<1x128xf32>
    %19 = arith.truncf %18 : vector<1x128xf32> to vector<1x128xbf16>
    %20 = vector.extract_strided_slice %6 {offsets = [17, 0], sizes = [1, 128], strides = [1, 1]} : vector<24x128xf32> to vector<1x128xf32>
    %21 = vector.broadcast %15 : f32 to vector<1x128xf32>
    %22 = arith.mulf %20, %21 : vector<1x128xf32>
    %23 = arith.truncf %22 : vector<1x128xf32> to vector<1x128xbf16>
    %24 = arith.truncf %7 : vector<16x128xf32> to vector<16x128xbf16>
    %c0_8 = arith.constant 0 : index
    %c128 = arith.constant 128 : index
    %25 = vector.load %arg10[%c0_8, %c128] : memref<16x384xbf16, #tpu.memory_space<vmem>>, vector<16x128xbf16>
    tpu.vector_store %arg10[%c0_8, %c128], %24 {strides = array<i32>} : memref<16x384xbf16, #tpu.memory_space<vmem>>, vector<16x128xbf16>,
    %26 = vector.extract_strided_slice %24 {offsets = [0, 0], sizes = [15, 128], strides = [1, 1]} : vector<16x128xbf16> to vector<15x128xbf16>
    %c1 = arith.constant 1 : index
    %c0_9 = arith.constant 0 : index
    %27 = vector.load %arg10[%c1, %c0_9] : memref<16x384xbf16, #tpu.memory_space<vmem>>, vector<15x128xbf16>
    tpu.vector_store %arg10[%c1, %c0_9], %26 {strides = array<i32>} : memref<16x384xbf16, #tpu.memory_space<vmem>>, vector<15x128xbf16>,
    %c0_10 = arith.constant 0 : index
    %c0_11 = arith.constant 0 : index
    %28 = vector.load %arg10[%c0_10, %c0_11] : memref<16x384xbf16, #tpu.memory_space<vmem>>, vector<1x128xbf16>
    tpu.vector_store %arg10[%c0_10, %c0_11], %19 {strides = array<i32>} : memref<16x384xbf16, #tpu.memory_space<vmem>>, vector<1x128xbf16>,
    %29 = vector.extract_strided_slice %24 {offsets = [1, 0], sizes = [15, 128], strides = [1, 1]} : vector<16x128xbf16> to vector<15x128xbf16>
    %c0_12 = arith.constant 0 : index
    %c256 = arith.constant 256 : index
    %30 = vector.load %arg10[%c0_12, %c256] : memref<16x384xbf16, #tpu.memory_space<vmem>>, vector<15x128xbf16>
    tpu.vector_store %arg10[%c0_12, %c256], %29 {strides = array<i32>} : memref<16x384xbf16, #tpu.memory_space<vmem>>, vector<15x128xbf16>,
    %c15 = arith.constant 15 : index
    %c256_13 = arith.constant 256 : index
    %31 = vector.load %arg10[%c15, %c256_13] : memref<16x384xbf16, #tpu.memory_space<vmem>>, vector<1x128xbf16>
    tpu.vector_store %arg10[%c15, %c256_13], %23 {strides = array<i32>} : memref<16x384xbf16, #tpu.memory_space<vmem>>, vector<1x128xbf16>,
    %c0_14 = arith.constant 0 : index
    %c0_15 = arith.constant 0 : index
    %32 = vector.load %arg10[%c0_14, %c0_15] : memref<16x384xbf16, #tpu.memory_space<vmem>>, vector<16x384xbf16>
    %c0_16 = arith.constant 0 : index
    %c0_17 = arith.constant 0 : index
    %33 = vector.load %arg5[%c0_16, %c0_17] : memref<384x128xbf16, #tpu.memory_space<vmem>>, vector<384x128xbf16>
    %cst_18 = arith.constant dense<0.000000e+00> : vector<16x128xf32>
    %34 = tpu.matmul %32, %33, %cst_18 {dimension_numbers = #tpu.dot_dimension_numbers<[1], [0], [0], [1], [0, 0, 1, 1], [], []>} : vector<16x384xbf16>, vector<384x128xbf16>, vector<16x128xf32> -> vector<16x128xf32>
    %c0_19 = arith.constant 0 : index
    %c0_20 = arith.constant 0 : index
    %35 = vector.load %arg6[%c0_19, %c0_20] : memref<1x128xf32, #tpu.memory_space<vmem>>, vector<1x128xf32>
    %36 = vector.broadcast %35 : vector<1x128xf32> to vector<16x128xf32>
    %37 = arith.addf %34, %36 : vector<16x128xf32>
    %cst_21 = arith.constant 5.000000e-01 : f32
    %38 = vector.broadcast %cst_21 : f32 to vector<16x128xf32>
    %39 = arith.mulf %38, %37 : vector<16x128xf32>
    %cst_22 = arith.constant 0.707106769 : f32
    %40 = vector.broadcast %cst_22 : f32 to vector<16x128xf32>
    %41 = arith.mulf %37, %40 : vector<16x128xf32>
    %42 = math.absf %41 : vector<16x128xf32>
    %cst_23 = arith.constant 0.327591091 : f32
    %43 = vector.broadcast %cst_23 : f32 to vector<16x128xf32>
    %44 = arith.mulf %43, %42 : vector<16x128xf32>
    %cst_24 = arith.constant 1.000000e+00 : f32
    %45 = vector.broadcast %cst_24 : f32 to vector<16x128xf32>
    %46 = arith.addf %45, %44 : vector<16x128xf32>
    %47 = tpu.reciprocal %46 {approx = true} : vector<16x128xf32> -> vector<16x128xf32>
    %cst_25 = arith.constant 1.06140542 : f32
    %48 = vector.broadcast %cst_25 : f32 to vector<16x128xf32>
    %49 = arith.mulf %48, %47 : vector<16x128xf32>
    %cst_26 = arith.constant -1.45315206 : f32
    %50 = vector.broadcast %cst_26 : f32 to vector<16x128xf32>
    %51 = arith.addf %49, %50 : vector<16x128xf32>
    %52 = arith.mulf %51, %47 : vector<16x128xf32>
    %cst_27 = arith.constant 1.42141378 : f32
    %53 = vector.broadcast %cst_27 : f32 to vector<16x128xf32>
    %54 = arith.addf %52, %53 : vector<16x128xf32>
    %55 = arith.mulf %54, %47 : vector<16x128xf32>
    %cst_28 = arith.constant -0.284496725 : f32
    %56 = vector.broadcast %cst_28 : f32 to vector<16x128xf32>
    %57 = arith.addf %55, %56 : vector<16x128xf32>
    %58 = arith.mulf %57, %47 : vector<16x128xf32>
    %cst_29 = arith.constant 0.254829586 : f32
    %59 = vector.broadcast %cst_29 : f32 to vector<16x128xf32>
    %60 = arith.addf %58, %59 : vector<16x128xf32>
    %61 = arith.mulf %60, %47 : vector<16x128xf32>
    %62 = arith.mulf %42, %42 : vector<16x128xf32>
    %cst_30 = arith.constant 0.000000e+00 : f32
    %63 = vector.broadcast %cst_30 : f32 to vector<16x128xf32>
    %64 = arith.subf %63, %62 : vector<16x128xf32>
    %65 = math.exp %64 : vector<16x128xf32>
    %66 = arith.mulf %61, %65 : vector<16x128xf32>
    %cst_31 = arith.constant 1.000000e+00 : f32
    %67 = vector.broadcast %cst_31 : f32 to vector<16x128xf32>
    %68 = arith.subf %67, %66 : vector<16x128xf32>
    %cst_32 = arith.constant 0.000000e+00 : f32
    %69 = vector.broadcast %cst_32 : f32 to vector<16x128xf32>
    %70 = arith.cmpf oge, %41, %69 : vector<16x128xf32>
    %cst_33 = arith.constant 0.000000e+00 : f32
    %71 = vector.broadcast %cst_33 : f32 to vector<16x128xf32>
    %72 = arith.subf %71, %68 : vector<16x128xf32>
    %73 = arith.select %70, %68, %72 : vector<16x128xi1>, vector<16x128xf32>
    %cst_34 = arith.constant 1.000000e+00 : f32
    %74 = vector.broadcast %cst_34 : f32 to vector<16x128xf32>
    %75 = arith.addf %74, %73 : vector<16x128xf32>
    %76 = arith.mulf %39, %75 : vector<16x128xf32>
    %77 = arith.truncf %76 : vector<16x128xf32> to vector<16x128xbf16>
    %c0_35 = arith.constant 0 : index
    %c0_36 = arith.constant 0 : index
    %78 = vector.load %arg7[%c0_35, %c0_36] : memref<128x128xbf16, #tpu.memory_space<vmem>>, vector<128x128xbf16>
    %cst_37 = arith.constant dense<0.000000e+00> : vector<16x128xf32>
    %79 = tpu.matmul %77, %78, %cst_37 {dimension_numbers = #tpu.dot_dimension_numbers<[1], [0], [0], [1], [0, 0, 1, 1], [], []>} : vector<16x128xbf16>, vector<128x128xbf16>, vector<16x128xf32> -> vector<16x128xf32>
    %c0_38 = arith.constant 0 : index
    %c0_39 = arith.constant 0 : index
    %80 = vector.load %arg8[%c0_38, %c0_39] : memref<1x128xf32, #tpu.memory_space<vmem>>, vector<1x128xf32>
    %81 = vector.broadcast %80 : vector<1x128xf32> to vector<16x128xf32>
    %82 = arith.addf %79, %81 : vector<16x128xf32>
    %c0_40 = arith.constant 0 : index
    %c0_41 = arith.constant 0 : index
    %c0_42 = arith.constant 0 : index
    %83 = vector.load %arg9[%c0_40, %c0_41, %c0_42] : memref<1x16x128xf32, #tpu.memory_space<vmem>>, vector<1x16x128xf32>
    %84 = vector.shape_cast %83 : vector<1x16x128xf32> to vector<16x128xf32>
    %85 = vector.shape_cast %82 : vector<16x128xf32> to vector<1x16x128xf32>
    tpu.vector_store %arg9[%c0_40, %c0_41, %c0_42], %85 {strides = array<i32>} : memref<1x16x128xf32, #tpu.memory_space<vmem>>, vector<1x16x128xf32>,
    return
  }
  func.func @transform_0(%arg0: i32, %arg1: i32) -> (i32, i32, i32, i32) {
    %c0_i32 = arith.constant 0 : i32
    %c0_i32_0 = arith.constant 0 : i32
    %c0_i32_1 = arith.constant 0 : i32
    return %arg0, %arg1, %c0_i32, %c0_i32_0 : i32, i32, i32, i32
  }
  func.func @transform_1(%arg0: i32, %arg1: i32) -> (i32, i32) {
    %c0_i32 = arith.constant 0 : i32
    %c0_i32_0 = arith.constant 0 : i32
    %c0_i32_1 = arith.constant 0 : i32
    return %c0_i32, %c0_i32_0 : i32, i32
  }
  func.func @transform_2(%arg0: i32, %arg1: i32) -> (i32, i32) {
    %c0_i32 = arith.constant 0 : i32
    %c0_i32_0 = arith.constant 0 : i32
    %c0_i32_1 = arith.constant 0 : i32
    return %c0_i32, %c0_i32_0 : i32, i32
  }
  func.func @transform_3(%arg0: i32, %arg1: i32) -> (i32, i32) {
    %c0_i32 = arith.constant 0 : i32
    %c0_i32_0 = arith.constant 0 : i32
    %c0_i32_1 = arith.constant 0 : i32
    return %c0_i32, %c0_i32_0 : i32, i32
  }
  func.func @transform_4(%arg0: i32, %arg1: i32) -> (i32, i32) {
    %c0_i32 = arith.constant 0 : i32
    %c0_i32_0 = arith.constant 0 : i32
    %c0_i32_1 = arith.constant 0 : i32
    return %c0_i32, %c0_i32_0 : i32, i32
  }
  func.func @transform_5(%arg0: i32, %arg1: i32) -> (i32, i32) {
    %c0_i32 = arith.constant 0 : i32
    %c0_i32_0 = arith.constant 0 : i32
    %c0_i32_1 = arith.constant 0 : i32
    return %c0_i32, %c0_i32_0 : i32, i32
  }
  func.func @transform_6(%arg0: i32, %arg1: i32) -> (i32, i32) {
    %c0_i32 = arith.constant 0 : i32
    %c0_i32_0 = arith.constant 0 : i32
    %c0_i32_1 = arith.constant 0 : i32
    return %c0_i32, %c0_i32_0 : i32, i32
  }
  func.func @transform_7(%arg0: i32, %arg1: i32) -> (i32, i32, i32) {
    %c0_i32 = arith.constant 0 : i32
    %c0_i32_0 = arith.constant 0 : i32
    return %arg0, %arg1, %c0_i32 : i32, i32, i32
  }
}

</mosaic_0001>

<bundles_post_ra>
// kernel: tpu_custom_call.1
= control target key start
LH: loop header
LB: loop body
LE: loop exit
PB: predicated region body
PF: predicated region fallthrough
CT: control target
= control target key end

     0   :  { %s2036_s0 = inlined_call_operand.hbm [shape: bf16[2,1,24,128], index: 0, kind: input, shape index: {}]   ;;  %s2037_s1 = inlined_call_operand.hbm [shape: bf16[128,128], index: 1, kind: input, shape index: {}]   ;;  %s2038_s2 = inlined_call_operand.vmem [shape: f32[1,128], index: 2, kind: input, shape index: {}]   ;;  %s2039_s3 = inlined_call_operand.hbm [shape: bf16[384,128], index: 3, kind: input, shape index: {}]   ;;  %s2040_s4 = inlined_call_operand.vmem [shape: f32[1,128], index: 4, kind: input, shape index: {}]   ;;  %s2041_s5 = inlined_call_operand.hbm [shape: bf16[128,128], index: 5, kind: input, shape index: {}]   ;;  %s2042_s6 = inlined_call_operand.vmem [shape: f32[1,128], index: 6, kind: input, shape index: {}]   ;;  %s2043_s7 = inlined_call_operand.hbm [shape: f32[2,16,128], index: 7, kind: output, shape index: {}]  }
   0x1   :  { %2052 = sst [smem:[#allocation18_spill]] %s2042_s6 }
   0x2   :  { %2053 = sst [smem:[#allocation19_spill]] %s2043_s7 }
   0x3   :  { %12 = vsyncpa [#allocation4], 0 }
   0x4   :  { %14 = vsyncpa [#allocation4 + $0x1], 0 }
   0x5   :  { %15 = vsyncpa [#allocation7], 0 }
   0x6   :  { %16 = vsyncpa [#allocation10], 0 }
   0x7   :  { %17 = vsyncpa [#allocation5], 0 }
   0x8   :  { %19 = vsyncpa [#allocation5 + $0x1], 0  ;;  %s1712_s24 = smov 0   ;;  %s1714_s25 = smov 0  }
   0x9   :  { %s1716_s26 = smov 0   ;;  %s1718_s27 = smov 0  }
   0xa   :  { %s1720_s28 = smov 0   ;;  %s1722_s29 = smov 0  }
   0xb LB: > { %2054 = sst [smem:[#allocation16_spill]] %s1639_s24  ;;  %s1129_s30 = sadd.s32 4294967295, %s1659_s29   ;;  %s1659_s29 = sphi %s1722_s29, %s25_s29   ;;  %s1655_s28 = sphi %s1720_s28, %s2080_s28   ;;  %s1651_s27 = sphi %s1718_s27, %s2079_s27   ;;  %s1647_s26 = sphi %s1716_s26, %s2078_s26   ;;  %s1643_s25 = sphi %s1714_s25, %s2077_s25   ;;  %s1639_s24 = sphi %s1712_s24, %s2076_s24  }
   0xc   : > { %s1130_s8 = sadd.s32 4294967294, %s1659_s29   ;;  %p59_p0 = scmp.ne.s32.totalorder %s1643_s25, %s1639_s24 }
   0xd   : > { %p1746_p1 = scmp.eq.s32.totalorder %s1129_s30, 0  ;;  %p1750_p2 = scmp.eq.s32.totalorder %s1129_s30, 1 }
   0xe   : > { %p217_p3 = scmp.eq.s32.totalorder %s1130_s8, 1  ;;  %p1131_p5 = scmp.ge.s32.totalorder %s1659_s29, 1 }
   0xf   : > { %s2055_s9 = scalar_select %p1746_p1, 1, 0 }
  0x10   : > { %s2056_s10 = scalar_select %p1750_p2, 1, 0 }
  0x11   : > { %p1756_p4 = por %p1746_p1, %p59_p0  ;;  %p1761_p6 = por %p217_p3, %p59_p0 }
  0x12   : > { %p224_p7 = scmp.lt.s32.totalorder %s1659_s29, 3  ;;  %s1661_s14 = smov [#allocation6]  }
  0x13   : > { %s2057_s11 = scalar_select %p1756_p4, 1, 0 }
  0x14   : > { %s2058_s12 = scalar_select %p1761_p6, 1, 0 }
  0x15   : > { %p1766_p8 = pnand %p1131_p5, %p224_p7  ;;  %s236_s15 = sshll.u32 %s1661_s14, 4  ;;  %s1770_s15 = int_to_ptr.vmem [resolvable:$true] %s236_s15 }
  0x16   : > { %2059 = sst [smem:[#allocation17_spill]] %s2058_s12  ;;  %s1662_s17 = smov [#allocation8]  }
  0x17   : > { %s2060_s13 = scalar_select %p1766_p8, 1, 0 }
  0x18   : > { %p1322_p9 = pneg %p1766_p8  ;;  %s252_s18 = sshll.u32 %s1662_s17, 4  ;;  %s1781_s18 = int_to_ptr.vmem [resolvable:$true] %s252_s18 }
  0x19   : > { %s1663_s19 = smov [#allocation9]   ;;  %s1455_s23 = scalar_lea.hbm %s2037_s1, 1024 }
  0x1a   : > { %p1777_p11 = pnand %p1322_p9, %p1746_p1  ;;  %s1783_s20 = sshll.u32 %s1663_s19, 4  ;;  %s269_s20 = int_to_ptr.vmem [resolvable:$true] %s1783_s20 }
  0x1b   : > { %p1456_p12 = scmp.ne.s32.totalorder %s2037_s1, %s1455_s23  ;;  %p1462_p5 = scmp.lt.u32.totalorder %s1455_s23, %s2037_s1 }
  0x1c   : > { %p1793_p13 = pneg %p1777_p11 }
  0x1e   : > { %p1458_p0 = pnand %p1793_p13, %p1456_p12 }
  0x20   : > { %p1459_p3 = pneg %p1458_p0 }
  0x22   : > { %p1464_p7 = pnand %p1462_p5, %p1459_p3 }
  0x24   : > { %1467 = shalt.err (!%p1464_p7)
}
  0x25   : > { %s1468_s21 = scalar_lea.vmem %s1770_s15, 1024  ;;  %p1476_p1 = scmp.lt.s32.totalorder %s1770_s15, %s1770_s15 }
  0x26   : > { %p1469_p9 = scmp.ne.s32.totalorder %s1770_s15, %s1468_s21  ;;  %p1477_p4 = scmp.lt.s32.totalorder %s1468_s21, %s1468_s21 }
  0x28   : > { %p1471_p10 = pnand %p1469_p9, %p1793_p13  ;;  %p1478_p12 = por %p1477_p4, %p1476_p1 }
  0x2a   : > { %p1472_p6 = pneg %p1471_p10 }
  0x2c   : > { %p1479_p0 = pnand %p1478_p12, %p1472_p6 }
  0x2e   : > { %1482 = shalt.err (!%p1479_p0)
}
  0x2f   : > { %s2051_s22 = smov 64   ;;  %s1665_s23 = smov 4  }
  0x30   : > { %1325 = dma.hbm_to_vmem [thread:$0]  (!%p1777_p11), %s2037_s1, 1024, %s1770_s15, [#allocation7], %s2051_s22, %s2051_s22, %s1665_s23  }
  0x31   : > { %s1483_s21 = scalar_lea.hbm %s2039_s3, 3072 }
  0x32   : > { %p1484_p1 = scmp.ne.s32.totalorder %s2039_s3, %s1483_s21  ;;  %p1490_p10 = scmp.lt.u32.totalorder %s1483_s21, %s2039_s3 }
  0x34   : > { %p1486_p4 = pnand %p1484_p1, %p1793_p13 }
  0x36   : > { %p1487_p6 = pneg %p1486_p4 }
  0x38   : > { %p1492_p3 = pnand %p1490_p10, %p1487_p6 }
  0x3a   : > { %1495 = shalt.err (!%p1492_p3)
}
  0x3b   : > { %s1496_s15 = scalar_lea.vmem %s1781_s18, 3072  ;;  %p1504_p12 = scmp.lt.s32.totalorder %s1781_s18, %s1781_s18 }
  0x3c   : > { %p1497_p5 = scmp.ne.s32.totalorder %s1781_s18, %s1496_s15  ;;  %p1505_p0 = scmp.lt.s32.totalorder %s1496_s15, %s1496_s15 }
  0x3e   : > { %p1499_p7 = pnand %p1497_p5, %p1793_p13  ;;  %p1506_p1 = por %p1505_p0, %p1504_p12 }
  0x40   : > { %p1500_p9 = pneg %p1499_p7 }
  0x42   : > { %p1507_p4 = pnand %p1506_p1, %p1500_p9 }
  0x44   : > { %1510 = shalt.err (!%p1507_p4)
}
  0x45   : > { %1328 = dma.hbm_to_vmem [thread:$0]  (!%p1777_p11), %s2039_s3, 3072, %s1781_s18, [#allocation7], %s2051_s22, %s2051_s22, %s1665_s23  }
  0x46   : > { %s1511_s30 = scalar_lea.hbm %s2041_s5, 1024 }
  0x47   : > { %p1512_p6 = scmp.ne.s32.totalorder %s2041_s5, %s1511_s30  ;;  %p1518_p5 = scmp.lt.u32.totalorder %s1511_s30, %s2041_s5 }
  0x49   : > { %p1514_p10 = pnand %p1512_p6, %p1793_p13 }
  0x4b   : > { %p1515_p3 = pneg %p1514_p10 }
  0x4d   : > { %p1520_p7 = pnand %p1518_p5, %p1515_p3 }
  0x4f   : > { %1523 = shalt.err (!%p1520_p7)
}
  0x50   : > { %s1524_s15 = scalar_lea.vmem %s269_s20, 1024  ;;  %p1532_p1 = scmp.lt.s32.totalorder %s269_s20, %s269_s20 }
  0x51   : > { %p1525_p9 = scmp.ne.s32.totalorder %s269_s20, %s1524_s15  ;;  %p1533_p4 = scmp.lt.s32.totalorder %s1524_s15, %s1524_s15 }
  0x53   : > { %p1527_p12 = pnand %p1525_p9, %p1793_p13  ;;  %p1534_p8 = por %p1533_p4, %p1532_p1 }
  0x55   : > { %p1528_p0 = pneg %p1527_p12 }
  0x57   : > { %p1535_p2 = pnand %p1534_p8, %p1528_p0 }
  0x59   : > { %1538 = shalt.err (!%p1535_p2)
}
  0x5a   : > { %1331 = dma.hbm_to_vmem [thread:$0]  (!%p1777_p11), %s2041_s5, 1024, %s269_s20, [#allocation10], %s2051_s22, %s2051_s22, %s1665_s23  }
  0x5b   : > { %s46_s14 = sadd.s32 1, %s1647_s26  ;;  %s37_s16 = sadd.s32 1, %s1655_s28 }
  0x5c   : > { %p53_p2 = scmp.ne.s32.totalorder %s1647_s26, %s1643_s25  ;;  %p39_p8 = scmp.ge.s32.totalorder %s37_s16, 2 }
  0x5d   : > { %p54_p13 = scmp.eq.s32.totalorder %s1659_s29, 0  ;;  %p2063_p6 = scmp.ne.s32.totalorder %s2056_s10, 0 }
  0x5e   : > { %p1343_p3 = scmp.lt.s32.totalorder %s1659_s29, 2  ;;  %s2082_s16 = smov (%p39_p8, %s37_s16), 0 }
  0x5f   : > { %p1872_p10 = por %p2063_p6, %p53_p2  ;;  %p55_p5 = por %p54_p13, %p53_p2 }
  0x60   : > { %s285_s24 = sand.u32 1, %s1647_s26   ;;  %s41_s12 = ssub.s32 %s1655_s28, %s2082_s16 }
  0x61   : > { %p44_p7 = scmp.eq.s32.totalorder %s41_s12, 0  ;;  %s1303_s20 = smul.u32 12, %s285_s24 }
  0x62   : > { %s1304_s30 = smul.u32 192, %s1655_s28  ;;  %p1883_p11 = pnand %p1343_p3, %p55_p5 }
  0x63   : > { %s1888_s10 = scalar_select %p44_p7, %s1647_s26, %s46_s14  }
  0x64   : > { %s1893_s21 = scalar_lea.hbm %s2036_s0, %s1304_s30  ;;  %s289_s15 = scalar_lea.vmem [#allocation3], %s1303_s20 }
  0x65   : > { %s298_s18 = sshll.u32 %s289_s15, 4  ;;  %s1897_s6 = scalar_lea.sflag [#allocation4], %s285_s24  ;;  %s1895_s18 = int_to_ptr.vmem [resolvable:$true] %s298_s18 }
  0x66   : > { %s1539_s12 = scalar_lea.hbm %s1893_s21, 192  ;;  %p1541_p12 = pneg %p1883_p11 }
  0x67   : > { %p1540_p9 = scmp.ne.s32.totalorder %s1893_s21, %s1539_s12  ;;  %s1544_s17 = scalar_lea.hbm %s2036_s0, 384 }
  0x68   : > { %p1545_p4 = scmp.lt.u32.totalorder %s1893_s21, %s2036_s0  ;;  %p1546_p2 = scmp.lt.u32.totalorder %s1544_s17, %s1539_s12 }
  0x69   : > { %p1542_p0 = pnand %p1541_p12, %p1540_p9  ;;  %p1548_p13 = scmp.lt.u32.totalorder %s1539_s12, %s1893_s21 }
  0x6a   : > { %p1547_p8 = por %p1546_p2, %p1545_p4 }
  0x6b   : > { %p1543_p1 = pneg %p1542_p0 }
  0x6c   : > { %p1549_p6 = por %p1548_p13, %p1547_p8 }
  0x6e   : > { %p1550_p3 = pnand %p1549_p6, %p1543_p1 }
  0x70   : > { %1553 = shalt.err (!%p1550_p3)
}
  0x71   : > { %s1554_s24 = scalar_lea.vmem %s1895_s18, 192  ;;  %s1666_s20 = smov [#allocation3]  }
  0x72   : > { %p1555_p5 = scmp.ne.s32.totalorder %s1895_s18, %s1554_s24  ;;  %s1559_s15 = sshll.u32 %s1666_s20, 4  ;;  %s1560_s15 = int_to_ptr.vmem [resolvable:$false] %s1559_s15 }
  0x73   : > { %s1561_s22 = scalar_lea.vmem %s1560_s15, 384  ;;  %p1562_p0 = scmp.lt.s32.totalorder %s1895_s18, %s1560_s15 }
  0x74   : > { %p1557_p7 = pnand %p1555_p5, %p1541_p12  ;;  %p1563_p4 = scmp.lt.s32.totalorder %s1561_s22, %s1554_s24 }
  0x76   : > { %p1558_p9 = pneg %p1557_p7  ;;  %p1564_p2 = por %p1563_p4, %p1562_p0 }
  0x78   : > { %p1565_p8 = pnand %p1564_p2, %p1558_p9 }
  0x7a   : > { %1568 = shalt.err (!%p1565_p8)
}
  0x7b   : > { %s2066_s12 = smov 64   ;;  %p2067_p12 = scmp.ne.s32.totalorder %s2060_s13, 0 }
  0x7c   : > { %1335 = dma.hbm_to_vmem [thread:$0]  (!%p1883_p11), %s1893_s21, 192, %s1895_s18, %s1897_s6, %s2066_s12, %s2066_s12, %s1665_s23  }
  0x7d   : > { %310 = sbr.rel (%p2067_p12) target bundleno = 916 (0x394), region = 48  ;;  %s1931_s14 = sand.u32 (!%p2067_p12), 1, %s1643_s25  }
  0x7e   : > { %s1305_s30 = smul.u32 (!%p2067_p12), 12, %s1931_s14  ;;  %s313_s17 = scalar_lea.sflag (!%p2067_p12), [#allocation4], %s1931_s14 }
  0x7f   : > { %p2068_p1 = scmp.ne.s32.totalorder (!%p2067_p12), %s2057_s11, 0 }
  0x80   : > { %s1935_s19 = scalar_lea.vmem (!%p2067_p12), [#allocation3], %s1305_s30 }
  0x84   : > { %1622 = dma.done.wait (%p2068_p1), %s313_s17, 192  }
  0x85   : > { %1624 = vsyncadd (%p2068_p1), %s313_s17, 4294967104  ;;  %p2069_p11 = scmp.ne.s32.totalorder %s2055_s9, 0 }
  0x87   : > { %1626 = dma.done.wait (%p2069_p11), [#allocation7], 4096  }
  0x88   : > { %1628 = vsyncadd (%p2069_p11), [#allocation7], 4294963200 }
  0x89   : > { %1630 = dma.done.wait (%p2069_p11), [#allocation10], 1024  }
  0x8a   : > { %1632 = vsyncadd (%p2069_p11), [#allocation10], 4294966272  ;;  %v1405_v0 = vld [vmem:[#allocation6] sm:$0xff]   ;;  %v1406_v1 = vld [vmem:[#allocation6 + $0x8] sm:$0xff]   ;;  %v1667_v13 = vmov 0.0   ;;  %vm1668_vm0 = vmmov 0  }
  0x8b   : > { %1243 = vmatprep.subr.bf16.mxu0 %v1405_v0  ;;  %v1407_v2 = vld [vmem:[#allocation6 + $0x10] sm:$0xff]   ;;  %v1408_v3 = vld [vmem:[#allocation6 + $0x18] sm:$0xff]   ;;  %v1409_v5 = vld [vmem:[#allocation6 + $0x20] sm:$0xff]   ;;  %vm517_vm1 = vcmask 1047552   ;;  %vm518_vm2 = vsmask.f32 7938 }
  0x8c   : > { %1244 = vmatpush3.bf16.msra.mxu0 %v1405_v0  ;;  %v1413_v4 = vld [vmem:[%s1935_s19] sm:$0xff]   ;;  %v1414_v9 = vld [vmem:[%s1935_s19 + $0x8] ss:$0 sps:$4 sm:$0xff]   ;;  %v1415_v10 = vld [vmem:[#allocation8 + $0x40] sm:$0xff]   ;;  %vm532_vm3 = vsmask.f32 7424 }
  0x8d   : > { %1245 = vmatprep.subr.bf16.mxu0 %v1406_v1  ;;  %1259 = vmatprep.mubr.bf16.mxu0 %v1413_v4  ;;  %v1410_v6 = vld [vmem:[#allocation6 + $0x28] sm:$0xff]   ;;  %v1411_v7 = vld [vmem:[#allocation6 + $0x30] sm:$0xff]   ;;  %v1412_v8 = vld [vmem:[#allocation6 + $0x38] sm:$0xff]   ;;  %vm523_vm6 = vcmask 1040384   ;;  %vm524_vm7 = vsmask.f32 256 }
  0x8e   : > { %v1416_v11 = vld [vmem:[#allocation8] sm:$0xff]   ;;  %1203 = vmatprep.subr.bf16.mxu1 %v1415_v10  ;;  %v1418_v14 = vld [vmem:[#allocation8 + $0x48] sm:$0xff]   ;;  %v1421_v17 = vld [vmem:[#allocation8 + $0x50] sm:$0xff]   ;;  %vm540_vm8 = vcmask 1047559   ;;  %vm541_vm9 = vsmask.f32 7966 }
  0x8f   : > { %v1417_v12 = vld [vmem:[#allocation8 + $0x80] sm:$0xff]   ;;  %1204 = vmatpush3.bf16.msra.mxu1 %v1416_v11  ;;  %v1419_v15 = vld [vmem:[#allocation8 + $0x8] sm:$0xff]   ;;  %v1422_v18 = vld [vmem:[#allocation8 + $0x10] sm:$0xff]   ;;  %s1141_s8 = sshll.u32 %s1931_s14, 4  ;;  %s2070_s6 = sld [smem:[#allocation18_spill]] }
  0x90   : > { %1246 = vmatpush3.bf16.msra.mxu0 %v1406_v1  ;;  %v1420_v16 = vld [vmem:[#allocation8 + $0x88] sm:$0xff]   ;;  %1205 = vmatprep.subr.bf16.mxu1 %v1418_v14  ;;  %v1423_v19 = vld [vmem:[#allocation8 + $0x90] sm:$0xff]   ;;  %v1424_v20 = vld [vmem:[#allocation8 + $0x58] sm:$0xff]   ;;  %s358_s24 = scalar_lea.vmem [#allocation11], %s1141_s8  ;;  %s1192_s15 = sshll.u32 %s1651_s27, 8 }
  0x91   : > { %1247 = vmatprep.subr.bf16.mxu0 %v1407_v2  ;;  %v1425_v21 = vld [vmem:[#allocation8 + $0x18] sm:$0xff]   ;;  %v1427_v23 = vld [vmem:[#allocation8 + $0x60] sm:$0xff]   ;;  %v1430_v26 = vld [vmem:[#allocation8 + $0x68] sm:$0xff]   ;;  %s1013_s20 = sshll.u32 %s358_s24, 4  ;;  %s2071_s30 = sld [smem:[#allocation19_spill]]  ;;  %s1982_s20 = int_to_ptr.vmem [resolvable:$true] %s1013_s20 }
  0x92   : > { %v1426_v22 = vld [vmem:[#allocation8 + $0x98] sm:$0xff]   ;;  %v1428_v24 = vld [vmem:[#allocation8 + $0x20] sm:$0xff]   ;;  %v1431_v27 = vld [vmem:[#allocation8 + $0x28] sm:$0xff]   ;;  %s998_s19 = scalar_lea.sflag [#allocation5], %s1931_s14  ;;  %s1569_s27 = scalar_lea.vmem %s1982_s20, 256 }
  0x93   : > { %1206 = vmatpush3.bf16.msra.mxu1 %v1419_v15  ;;  %v1429_v25 = vld [vmem:[#allocation8 + $0xa0] sm:$0xff]   ;;  %v1432_v28 = vld [vmem:[#allocation8 + $0xa8] sm:$0xff]   ;;  %v1433_v29 = vld [vmem:[#allocation8 + $0x70] sm:$0xff]   ;;  %p1570_p13 = scmp.ne.s32.totalorder %s1982_s20, %s1569_s27  ;;  %s1669_s9 = smov [#allocation11]  }
  0x94   : > { %1248 = vmatpush3.bf16.msra.mxu0 %v1407_v2  ;;  %1207 = vmatprep.subr.bf16.mxu1 %v1421_v17  ;;  %v1434_v30 = vld [vmem:[#allocation8 + $0x30] sm:$0xff]   ;;  %v1436_v32 = vld [vmem:[#allocation8 + $0x78] sm:$0xff]   ;;  %vm519_vm4 = vmand %vm517_vm1, %vm518_vm2  ;;  %s1573_s11 = sshll.u32 %s1669_s9, 4  ;;  %s1574_s11 = int_to_ptr.vmem [resolvable:$false] %s1573_s11 }
  0x95   : > { %1249 = vmatprep.subr.bf16.mxu0 %v1408_v3  ;;  %v1435_v31 = vld [vmem:[#allocation8 + $0xb0] sm:$0xff]   ;;  %v1437_v33 = vld [vmem:[#allocation8 + $0x38] sm:$0xff]   ;;  %vm533_vm5 = vmand %vm517_vm1, %vm532_vm3  ;;  %p1571_p6 = pnand %p1570_p13, %p1872_p10  ;;  %s1575_s13 = scalar_lea.vmem %s1574_s11, 512 }
  0x96   : > { %v1438_v34 = vld [vmem:[#allocation8 + $0xb8] sm:$0xff]   ;;  %v1142_v36 = vld [vmem:[%s2038_s2] ss:$0 sm:$0xff]  ;;  %v534_v49 = vld [vmem:[#allocation2 + $0x10] sm:$0xff]  ;;  %p1576_p5 = scmp.lt.s32.totalorder %s1982_s20, %s1574_s11  ;;  %p1577_p7 = scmp.lt.s32.totalorder %s1575_s13, %s1569_s27 }
  0x97   : > { %1208 = vmatpush3.bf16.msra.mxu1 %v1422_v18  ;;  %v520_v48 = vld [vmem:[#allocation2] sm:$0xff]  ;;  %vm525_vm10 = vmand %vm523_vm6, %vm524_vm7  ;;  %v1439_v63 = vld [vmem:[#allocation9] sm:$0xff]   ;;  %s1987_s17 = scalar_lea.hbm %s2071_s30, %s1192_s15  ;;  %p1572_p3 = pneg %p1571_p6 }
  0x98   : > { %1250 = vmatpush3.bf16.msra.mxu0 %v1408_v3  ;;  %1209 = vmatprep.subr.bf16.mxu1 %v1424_v20  ;;  %vm542_vm11 = vmand %vm540_vm8, %vm541_vm9  ;;  %v1440_v0 = vld [vmem:[#allocation9 + $0x8] sm:$0xff]   ;;  %v1441_v1 = vld [vmem:[#allocation9 + $0x10] sm:$0xff]   ;;  %p1578_p9 = por %p1577_p7, %p1576_p5 }
  0x99   : > { %1251 = vmatprep.subr.bf16.mxu0 %v1409_v5  ;;  %v1442_v2 = vld [vmem:[#allocation9 + $0x18] sm:$0xff]   ;;  %v1443_v3 = vld [vmem:[#allocation9 + $0x20] sm:$0xff]   ;;  %v1444_v4 = vld [vmem:[#allocation9 + $0x28] sm:$0xff]  }
  0x9a   : > { %p1579_p0 = pnand %p1578_p9, %p1572_p3 }
  0x9b   : > { %1210 = vmatpush3.bf16.msra.mxu1 %v1425_v21 }
  0x9c   : > { %1252 = vmatpush3.bf16.msra.mxu0 %v1409_v5  ;;  %1211 = vmatprep.subr.bf16.mxu1 %v1427_v23  ;;  %v1445_v5 = vld [vmem:[#allocation9 + $0x30] sm:$0xff]  }
  0x9d   : > { %1253 = vmatprep.subr.bf16.mxu0 %v1410_v6 }
  0x9f   : > { %1212 = vmatpush3.bf16.msra.mxu1 %v1428_v24 }
  0xa0   : > { %1254 = vmatpush3.bf16.msra.mxu0 %v1410_v6  ;;  %1213 = vmatprep.subr.bf16.mxu1 %v1430_v26  ;;  %v1446_v6 = vld [vmem:[#allocation9 + $0x38] sm:$0xff]  }
  0xa1   : > { %1255 = vmatprep.subr.bf16.mxu0 %v1411_v7 }
  0xa3   : > { %1214 = vmatpush3.bf16.msra.mxu1 %v1431_v27 }
  0xa4   : > { %1256 = vmatpush3.bf16.msra.mxu0 %v1411_v7  ;;  %1215 = vmatprep.subr.bf16.mxu1 %v1433_v29 }
  0xa5   : > { %1257 = vmatprep.subr.bf16.mxu0 %v1412_v8 }
  0xa7   : > { %1216 = vmatpush3.bf16.msra.mxu1 %v1434_v30 }
  0xa8   : > { %1258 = vmatpush3.bf16.msra.mxu0 %v1412_v8  ;;  %1217 = vmatprep.subr.bf16.mxu1 %v1436_v32 }
  0xa9   : > { %1263 = vmatprep.subr.bf16.mxu0 %v1667_v13 }
  0xab   : > { %1260 = vmatmul.mubr.bf16.vlgmr.msra.gmra.mrb[0].mxu0 %v1414_v9  ;;  %1218 = vmatpush3.bf16.msra.mxu1 %v1437_v33  ;;  %v1153_v9 = vld [vmem:[%s2040_s4] ss:$0 sm:$0xff] }
  0xac   : > { %1264 = vmatpush3.bf16.msra.mxu0 %v1417_v12  ;;  %1279 = vmatprep.mubr.msk.bf16.mxu0 %vm1668_vm0, %v1667_v13 }
  0xad   : > { %1265 = vmatprep.subr.bf16.mxu0 %v1667_v13  ;;  %1283 = vmatprep.subr.bf16.mxu1 %v1667_v13 }
  0xb0   : > { %1266 = vmatpush3.bf16.msra.mxu0 %v1420_v16 }
  0xb1   : > { %1267 = vmatprep.subr.bf16.mxu0 %v1667_v13 }
  0xb4   : > { %1268 = vmatpush3.bf16.msra.mxu0 %v1423_v19 }
  0xb5   : > { %1269 = vmatprep.subr.bf16.mxu0 %v1667_v13 }
  0xb8   : > { %1270 = vmatpush3.bf16.msra.mxu0 %v1426_v22 }
  0xb9   : > { %1271 = vmatprep.subr.bf16.mxu0 %v1667_v13 }
  0xbc   : > { %1272 = vmatpush3.bf16.msra.mxu0 %v1429_v25 }
  0xbd   : > { %1273 = vmatprep.subr.bf16.mxu0 %v1667_v13 }
  0xc0   : > { %1274 = vmatpush3.bf16.msra.mxu0 %v1432_v28 }
  0xc1   : > { %1275 = vmatprep.subr.bf16.mxu0 %v1667_v13 }
  0xc4   : > { %1276 = vmatpush3.bf16.msra.mxu0 %v1435_v31 }
  0xc5   : > { %1277 = vmatprep.subr.bf16.mxu0 %v1667_v13 }
  0xc8   : > { %1278 = vmatpush3.bf16.msra.mxu0 %v1438_v34 }
 0x17e   : > { %v1261_v35 = vpop.f32.mrb[0].mxu0 }
 0x17f   : > { %v479_v37 = vpop.f32.mrb[1].mxu0  ;;  %v488_v45 = vadd.f32 %v1261_v35, %v1142_v36 }
 0x180   : > { %v1262_v38 = vpop.f32.mrb[2].mxu0  ;;  %v480_v40 = vadd.f32 %v1142_v36, %v479_v37 }
 0x181   : > { %v482_v39 = vpop.f32.mrb[3].mxu0  ;;  %v502_v52 = vmul.f32 0.0, %v488_v45 }
 0x182   : > { %v483_v41 = vadd.f32 %v1142_v36, %v482_v39 }
 0x183   : > { %v503_v55 = vpack.c.bf16 %v502_v52, %v502_v52 }
 0x184   : > { %v507_v42 = vpack.c.bf16 %v483_v41, %v480_v40 }
 0x185   : > { %v538_v56 = vrot.slane %v503_v55, 1 }
 0x186   : > { %v510_v43 = vshrl.u32 %v507_v42, 16  ;;  %v513_v44 = vshll.u32 %v507_v42, 16  ;;  %780 = vmatprep.mubr.bf16.mxu1 %v507_v42 }
 0x188   : > { %v512_v46 = vrot.slane %v510_v43, 7  ;;  %v529_v47 = vrot.slane %v513_v44, 1 }
 0x18a   : > { %v515_v50 = vor.u32 %v513_v44, %v512_v46  ;;  %v530_v51 = vor.u32 %v529_v47, %v510_v43 }
 0x18c   : > { %v521_v53 = vsel %vm519_vm4, %v515_v50, %v520_v48  ;;  %v535_v54 = vsel %vm533_vm5, %v530_v51, %v534_v49 }
 0x18d   : > { %522 = vst [vmem:[#allocation2] sm:$0xff] %v521_v53  ;;  %536 = vst [vmem:[#allocation2 + $0x10] sm:$0xff] %v535_v54 }
 0x194   : > { %v526_v57 = vld [vmem:[#allocation2] sm:$0x1]  ;;  %v543_v58 = vld [vmem:[#allocation2 + $0x10] sm:$0x80] }
 0x195   : > { %v527_v59 = vsel %vm525_vm10, %v503_v55, %v526_v57  ;;  %v544_v60 = vsel %vm542_vm11, %v538_v56, %v543_v58 }
 0x196   : > { %528 = vst [vmem:[#allocation2] sm:$0x1] %v527_v59  ;;  %545 = vst [vmem:[#allocation2 + $0x10] sm:$0x80] %v544_v60 }
 0x19d   : > { %v546_v61 = vld [vmem:[#allocation2] sm:$0xff]  ;;  %v548_v62 = vld [vmem:[#allocation2 + $0x10] sm:$0xff] }
 0x19e   : > { %781 = vmatmul.mubr.bf16.vlgmr.msra.gmra.mrb[0].mxu1 %v546_v61  ;;  %1280 = vmatmul.mubr.bf16.vlgmr.msra.gmra.mrb[4].mxu0 %v548_v62 }
 0x19f   : > { %1299 = vmatprep.mubr.msk.bf16.mxu1 %vm1668_vm0, %v1667_v13  ;;  %1284 = vmatpush3.bf16.msra.mxu1 %v1439_v63 }
 0x1a0   : > { %1285 = vmatprep.subr.bf16.mxu1 %v1667_v13 }
 0x1a3   : > { %1286 = vmatpush3.bf16.msra.mxu1 %v1440_v0 }
 0x1a4   : > { %1287 = vmatprep.subr.bf16.mxu1 %v1667_v13 }
 0x1a7   : > { %1288 = vmatpush3.bf16.msra.mxu1 %v1441_v1 }
 0x1a8   : > { %1289 = vmatprep.subr.bf16.mxu1 %v1667_v13 }
 0x1ab   : > { %1290 = vmatpush3.bf16.msra.mxu1 %v1442_v2 }
 0x1ac   : > { %1291 = vmatprep.subr.bf16.mxu1 %v1667_v13 }
 0x1af   : > { %1292 = vmatpush3.bf16.msra.mxu1 %v1443_v3 }
 0x1b0   : > { %1293 = vmatprep.subr.bf16.mxu1 %v1667_v13 }
 0x1b3   : > { %1294 = vmatpush3.bf16.msra.mxu1 %v1444_v4 }
 0x1b4   : > { %1295 = vmatprep.subr.bf16.mxu1 %v1667_v13 }
 0x1b7   : > { %1296 = vmatpush3.bf16.msra.mxu1 %v1445_v5 }
 0x1b8   : > { %1297 = vmatprep.subr.bf16.mxu1 %v1667_v13 }
 0x1bb   : > { %1298 = vmatpush3.bf16.msra.mxu1 %v1446_v6 }
 0x271   : > { %v1219_v7 = vpop.f32.mrb[0].mxu1  ;;  %v823_v8 = vpop.f32.mrb[4].mxu0 }
 0x272   : > { %v1220_v10 = vpop.f32.mrb[1].mxu1  ;;  %v1281_v11 = vpop.f32.mrb[5].mxu0 }
 0x273   : > { %v1221_v12 = vadd.f32 %v1220_v10, %v1219_v7  ;;  %v1222_v14 = vpop.f32.mrb[2].mxu1  ;;  %v826_v15 = vpop.f32.mrb[6].mxu0 }
 0x274   : > { %v1223_v16 = vpop.f32.mrb[3].mxu1  ;;  %v1282_v17 = vpop.f32.mrb[7].mxu0 }
 0x275   : > { %v783_v18 = vadd.f32 %v1221_v12, %v1153_v9  ;;  %v1224_v19 = vadd.f32 %v1223_v16, %v1222_v14 }
 0x277   : > { %v824_v20 = vadd.f32 %v823_v8, %v783_v18  ;;  %v786_v21 = vadd.f32 %v1224_v19, %v1153_v9  ;;  %v1178_v9 = vld [vmem:[%s2070_s6] ss:$0 sm:$0xff] }
 0x279   : > { %v832_v13 = vmul.f32 0.70710677, %v824_v20  ;;  %v827_v22 = vadd.f32 %v826_v15, %v786_v21  ;;  %v830_v3 = vmul.f32 0.5, %v824_v20 }
 0x27b   : > { %v834_v23 = vand.u32 2147483647, %v832_v13  ;;  %v833_v24 = vmul.f32 0.70710677, %v827_v22  ;;  %vm872_vm12 = vcmp.ge.f32.partialorder %v832_v13, 0.0  ;;  %v831_v4 = vmul.f32 0.5, %v827_v22 }
 0x27d   : > { %v836_v25 = vmul.f32 0.3275911, %v834_v23  ;;  %v835_v26 = vand.u32 2147483647, %v833_v24  ;;  %v860_v30 = vmul.f32 %v834_v23, %v834_v23  ;;  %vm873_vm13 = vcmp.ge.f32.partialorder %v833_v24, 0.0 }
 0x27f   : > { %v838_v27 = vadd.f32 1.0, %v836_v25  ;;  %v837_v28 = vmul.f32 0.3275911, %v835_v26  ;;  %v861_v31 = vmul.f32 %v835_v26, %v835_v26  ;;  %v862_v33 = vsub.f32 0.0, %v860_v30 }
 0x281   : > { %1447 = vrcp.f32 %v838_v27  ;;  %v839_v29 = vadd.f32 1.0, %v837_v28  ;;  %v863_v37 = vsub.f32 0.0, %v861_v31  ;;  %v864_v38 = vmul.f32 1.442695, %v862_v33 }
 0x283   : > { %1449 = vrcp.f32 %v839_v29  ;;  %v866_v43 = vmul.f32 1.442695, %v863_v37 }
 0x284   : > { %1451 = vpow2.f32 %v864_v38 }
 0x285   : > { %1453 = vpow2.f32 %v866_v43 }
 0x28b   : > { %v1448_v32 = vpop.eup %1447 }
 0x28c   : > { %v842_v34 = vmul.f32 1.0614054, %v1448_v32 }
 0x28d   : > { %v1450_v35 = vpop.eup %1449 }
 0x28e   : > { %v844_v36 = vadd.f32 -1.4531521, %v842_v34  ;;  %v843_v39 = vmul.f32 1.0614054, %v1450_v35  ;;  %v1452_v54 = vpop.eup %1451 }
 0x28f   : > { %v1454_v58 = vpop.eup %1453 }
 0x290   : > { %v846_v40 = vmul.f32 %v1448_v32, %v844_v36  ;;  %v845_v41 = vadd.f32 -1.4531521, %v843_v39 }
 0x292   : > { %v848_v42 = vadd.f32 1.4214138, %v846_v40  ;;  %v847_v44 = vmul.f32 %v1450_v35, %v845_v41 }
 0x294   : > { %v850_v45 = vmul.f32 %v1448_v32, %v848_v42  ;;  %v849_v46 = vadd.f32 1.4214138, %v847_v44 }
 0x296   : > { %v852_v47 = vadd.f32 -0.28449672, %v850_v45  ;;  %v851_v48 = vmul.f32 %v1450_v35, %v849_v46 }
 0x298   : > { %v854_v49 = vmul.f32 %v1448_v32, %v852_v47  ;;  %v853_v50 = vadd.f32 -0.28449672, %v851_v48 }
 0x29a   : > { %v856_v51 = vadd.f32 0.2548296, %v854_v49  ;;  %v855_v52 = vmul.f32 %v1450_v35, %v853_v50 }
 0x29c   : > { %v858_v53 = vmul.f32 %v1448_v32, %v856_v51  ;;  %v857_v55 = vadd.f32 0.2548296, %v855_v52 }
 0x29e   : > { %v868_v56 = vmul.f32 %v1452_v54, %v858_v53  ;;  %v859_v57 = vmul.f32 %v1450_v35, %v857_v55 }
 0x2a0   : > { %v870_v59 = vsub.f32 1.0, %v868_v56  ;;  %v869_v60 = vmul.f32 %v1454_v58, %v859_v57 }
 0x2a2   : > { %v874_v61 = vsub.f32 0.0, %v870_v59  ;;  %v871_v62 = vsub.f32 1.0, %v869_v60 }
 0x2a4   : > { %v876_v63 = vsel %vm872_vm12, %v870_v59, %v874_v61  ;;  %v875_v0 = vsub.f32 0.0, %v871_v62 }
 0x2a5   : > { %v878_v1 = vadd.f32 1.0, %v876_v63 }
 0x2a6   : > { %v877_v2 = vsel %vm873_vm13, %v871_v62, %v875_v0 }
 0x2a7   : > { %v879_v5 = vadd.f32 1.0, %v877_v2  ;;  %v880_v6 = vmul.f32 %v878_v1, %v830_v3 }
 0x2a9   : > { %v881_v7 = vmul.f32 %v879_v5, %v831_v4 }
 0x2ab   : > { %v882_v8 = vpack.c.bf16 %v881_v7, %v880_v6 }
 0x2ad   : > { %1300 = vmatmul.mubr.bf16.vlgmr.msra.gmra.mrb[4].mxu1 %v882_v8 }
 0x380   : > { %v988_v10 = vpop.f32.mrb[4].mxu1 }
 0x381   : > { %v989_v11 = vadd.f32 %v1178_v9, %v988_v10  ;;  %v1301_v12 = vpop.f32.mrb[5].mxu1 }
 0x382   : > { %v991_v14 = vpop.f32.mrb[6].mxu1 }
 0x383   : > { %995 = vst [vmem:[%s358_s24] sm:$0xff] %v989_v11  ;;  %v992_v15 = vadd.f32 %v1178_v9, %v991_v14  ;;  %v1302_v16 = vpop.f32.mrb[7].mxu1 }
 0x385   : > { %996 = vst [vmem:[%s358_s24 + $0x8] sm:$0xff] %v992_v15 }
 0x386   : > { %1582 = shalt.err (!%p1579_p0)
}
 0x387   : > { %s1583_s23 = scalar_lea.hbm %s1987_s17, 256  ;;  %s1587_s18 = scalar_lea.hbm %s2071_s30, 512 }
 0x388   : > { %p1584_p4 = scmp.ne.s32.totalorder %s1987_s17, %s1583_s23  ;;  %p1588_p12 = scmp.lt.u32.totalorder %s1987_s17, %s2071_s30 }
 0x389   : > { %p1589_p1 = scmp.lt.u32.totalorder %s1587_s18, %s1583_s23  ;;  %p1591_p13 = scmp.lt.u32.totalorder %s1583_s23, %s1987_s17 }
 0x38a   : > { %p1585_p2 = pnand %p1584_p4, %p1872_p10 }
 0x38b   : > { %p1590_p11 = por %p1589_p1, %p1588_p12 }
 0x38c   : > { %p1586_p8 = pneg %p1585_p2 }
 0x38d   : > { %p1592_p6 = por %p1591_p13, %p1590_p11 }
 0x38f   : > { %p1593_p3 = pnand %p1592_p6, %p1586_p8 }
 0x391   : > { %1596 = shalt.err (!%p1593_p3)
}
 0x392   : > { %s1670_s15 = smov 128   ;;  %s1671_s22 = smov 8  }
 0x393   : > { %1320 = dma.vmem_to_hbm [thread:$0]  (%p1872_p10), %s1982_s20, 256, %s1987_s17, %s998_s19, %s1670_s15, %s1670_s15, %s1671_s22  }
 0x394 PF: > { %s2072_s12 = sld [smem:[#allocation16_spill]]  ;;  %s2073_s27 = sld [smem:[#allocation17_spill]] }
 0x395   : > { %p2075_p7 = scmp.ge.s32.totalorder %s1659_s29, 2 }
 0x39a   : > { %s1028_s9 = sand.u32 1, %s2072_s12   ;;  %p2074_p5 = scmp.ne.s32.totalorder %s2073_s27, 0 }
 0x39b   : > { %s1029_s11 = scalar_lea.sflag [#allocation5], %s1028_s9 }
 0x39c   : > { %p1337_p9 = pnand %p2075_p7, %p2074_p5 }
 0x39e   : > { %1634 = dma.done.wait (!%p1337_p9), %s1029_s11, 256  }
 0x39f   : > { %1636 = vsyncadd (!%p1337_p9), %s1029_s11, 4294967040  ;;  %s25_s29 = sadd.s32 1, %s1659_s29   ;;  %s2076_s24 = smov %s1643_s25 }
 0x3a0   : > { %p22_p0 = scmp.ge.s32.totalorder %s25_s29, 4   ;;  %s2077_s25 = smov %s1647_s26 }
 0x3a1   : > { %s2078_s26 = smov %s1888_s10  ;;  %s2079_s27 = smov %s1655_s28 }
 0x3a2   : > { %s2080_s28 = smov %s2082_s16  ;;  %24 = sbr.rel (!%p22_p0) target bundleno = 11 (0xb), region = 105 }
 0x3a9   :  { %1034 = vsyncpa [#allocation4], 1 }
 0x3aa   :  { %1036 = vsyncpa [#allocation4 + $0x1], 1 }
 0x3ab   :  { %1037 = vsyncpa [#allocation7], 1 }
 0x3ac   :  { %1038 = vsyncpa [#allocation10], 1 }
 0x3ad   :  { %1039 = vsyncpa [#allocation5], 1 }
 0x3ae   :  { %1041 = vsyncpa [#allocation5 + $0x1], 1 }

</bundles_post_ra>
